<compile_context>
chip_gen: v7x
topology: tpu7x:2x2x1
jax: 0.10.0
libtpu: 0.0.40
codegen_flags: <defaults>
</compile_context>

<pallas_src>
import functools

import numpy as np
import jax
import jax.numpy as jnp
from jax.experimental import pallas as pl
from jax.experimental.pallas import tpu as pltpu


def _conv3x3_bias_tanh_kernel(x_ref, w_ref, b_ref, o_ref):
    """3x3 conv as one MXU matmul vs a block-Toeplitz weight, + bias, tanh.

    x_ref : (M_blk, K_pad)  lane-fused 3-row activation band (output rows)
    w_ref : (K_pad, NC)     block-Toeplitz conv weights, columns (co, ry, x, rx)
    b_ref : (1, NC)         bias broadcast over x (lane-dense)
    o_ref : (M_blk, NC)     tanh(conv + bias), lane-dense (NC multiple of 128)
    """
    acc = jnp.dot(x_ref[...], w_ref[...], preferred_element_type=jnp.float32)
    o_ref[...] = jnp.tanh(acc + b_ref[...])


def build_upscale_ps_tables(weight_oihw, bias, scale, W):
    """Init-time (numpy) precompute of the block-Toeplitz matrix T and bias.

    Depends only on the module weights, so nothing weight-derived is dispatched
    per forward call.  Column order is (co, ry, x, rx) so the post-kernel
    PixelShuffle is a single contiguous-run transpose.

    Returns:
      T       : (K_pad, W*Cout_r2) f32, K_pad = 3*(W+2)*Cin rounded up to 128.
      b_tiled : (1, W*Cout_r2)     f32.
    """
    w = np.asarray(weight_oihw, dtype=np.float32)        # (Cout_r2, Cin, 3, 3)
    b = np.asarray(bias, dtype=np.float32)
    Cout_r2, Cin, kh, kw = w.shape
    assert (kh, kw) == (3, 3)
    r = scale
    C_out = Cout_r2 // (r * r)
    Wp = W + 2
    K = 3 * Wp * Cin
    K_pad = ((K + 127) // 128) * 128                     # aligned contraction dim
    NC = W * Cout_r2

    # Natural column order (x, co, ry, rx):
    #   T_nat[dy*Wp*Cin + (x+dx)*Cin + ci, x*Cout_r2 + fc] = w[fc, ci, dy, dx]
    wk = w.transpose(2, 3, 1, 0).reshape(3, 3 * Cin, Cout_r2)   # per-dy slabs
    T3 = np.zeros((3, Wp * Cin, NC), dtype=np.float32)
    for x in range(W):                                   # numpy, init-time only
        T3[:, x * Cin:(x + 3) * Cin, x * Cout_r2:(x + 1) * Cout_r2] = wk
    T = np.zeros((K_pad, NC), dtype=np.float32)          # zero rows pad K -> K_pad
    T[:K] = T3.reshape(K, NC)
    # Permute columns (x, co, ry, rx) -> (co, ry, x, rx).
    T = T.reshape(K_pad, W, C_out, r, r).transpose(0, 2, 3, 1, 4).reshape(K_pad, NC)

    b_tiled = np.broadcast_to(b.reshape(C_out, r, 1, r), (C_out, r, W, r))
    b_tiled = np.ascontiguousarray(b_tiled).reshape(1, NC)

    return jnp.asarray(T), jnp.asarray(b_tiled)


def _use_per_image_grid(batch):
    """Per-image 'parallel' grid only pays off with 2 TensorCores/chip (v7x)."""
    if batch < 2:
        return False
    try:
        kind = jax.devices()[0].device_kind.lower()
    except Exception:
        return False
    return "v7" in kind


@functools.partial(jax.jit, static_argnames=("scale", "rows_per_step"))
def upscale_ps_forward(x_nchw, T, b_tiled, *, scale, rows_per_step):
    """Equivalent of UpscalePS.forward.  x_nchw: (N, Cin, H, W) float32."""
    N, Cin, H, W = x_nchw.shape
    K_pad, NC = T.shape
    Cout_r2 = NC // W
    r = scale
    C_out = Cout_r2 // (r * r)
    Wp = W + 2
    K = 3 * Wp * Cin
    M = N * H
    assert M % rows_per_step == 0

    # --- activations: NCHW -> NHWC, pad=1, fuse (W+2, Cin) onto lanes, stack the
    #     three kh-shifted row bands, zero-pad lanes K -> K_pad, fold batch into M.
    #     band[n*H + y, dy*Wp*Cin + xp*Cin + ci] = x_pad[n, y+dy, xp, ci]
    x_nhwc = jnp.transpose(x_nchw, (0, 2, 3, 1))
    x_pad = jnp.pad(x_nhwc, ((0, 0), (1, 1), (1, 1), (0, 0)))
    x_rows = x_pad.reshape(N, H + 2, Wp * Cin)
    # TODO(synk): for large H*W*Cin, skip this concat and do three accumulating
    # per-dy dots in-kernel against x_rows (avoids materializing 3x activations).
    band = jnp.concatenate([x_rows[:, dy:dy + H, :] for dy in range(3)], axis=-1)
    band = jnp.pad(band, ((0, 0), (0, 0), (0, K_pad - K)))
    band = band.reshape(M, K_pad)

    grid = (M // rows_per_step,)
    conv_out = pl.pallas_call(
        _conv3x3_bias_tanh_kernel,
        out_shape=jax.ShapeDtypeStruct((M, NC), jnp.float32),
        grid=grid,
        in_specs=[
            pl.BlockSpec((rows_per_step, K_pad), lambda i: (i, 0)),
            # Constant index_map: weights/bias DMA'd once, resident across grid.
            # (For the scaled O(W^2) variant, add pipeline_mode=pl.Buffered(1)
            #  and tile the NC columns.)
            pl.BlockSpec((K_pad, NC), lambda i: (0, 0)),
            pl.BlockSpec((1, NC), lambda i: (0, 0)),
        ],
        out_specs=pl.BlockSpec((rows_per_step, NC), lambda i: (i, 0)),
        compiler_params=pltpu.CompilerParams(
            dimension_semantics=("parallel",)),
    )(band, T, b_tiled)

    # --- PixelShuffle: columns already ordered (co, ry, x, rx), so this is one
    #     outer transpose moving contiguous (r*W*r)-element runs.
    y = conv_out.reshape(N, H, C_out, r, W, r)
    y = jnp.transpose(y, (0, 2, 1, 3, 4, 5)).reshape(N, C_out, H * r, W * r)
    return y


def _reference_forward(x_nchw, weight_oihw, bias, scale):
    """Pure-JAX reference (lax conv) for correctness checking."""
    N, Cin, H, W = x_nchw.shape
    Cout_r2 = weight_oihw.shape[0]
    C_out = Cout_r2 // (scale * scale)
    conv = jax.lax.conv_general_dilated(
        x_nchw, weight_oihw, window_strides=(1, 1), padding="SAME",
        dimension_numbers=("NCHW", "OIHW", "NCHW"))
    conv = jnp.tanh(conv + bias[None, :, None, None])
    y = conv.reshape(N, C_out, scale, scale, H, W)
    y = jnp.transpose(y, (0, 1, 4, 2, 5, 3)).reshape(N, C_out, H * scale, W * scale)
    return y


if __name__ == "__main__":
    # Module config: UpscalePS(input_ch=4, output_ch=4, scale=2)
    input_ch, output_ch, scale = 4, 4, 2
    N, H, W = 2, 16, 16
    cout_r2 = output_ch * scale ** 2

    key = jax.random.PRNGKey(0)
    kx, kw, kb = jax.random.split(key, 3)

    x = jax.random.normal(kx, (N, input_ch, H, W), dtype=jnp.float32)
    # Deterministic Conv2d-like init: uniform(-1/sqrt(fan_in), 1/sqrt(fan_in))
    fan_in = input_ch * 3 * 3
    bound = 1.0 / float(np.sqrt(fan_in))
    weight = jax.random.uniform(kw, (cout_r2, input_ch, 3, 3),
                                dtype=jnp.float32, minval=-bound, maxval=bound)
    bias = jax.random.uniform(kb, (cout_r2,), dtype=jnp.float32,
                              minval=-bound, maxval=bound)

    # Init-time precompute (depends only on the weights; never rebuilt per call).
    T, b_tiled = build_upscale_ps_tables(weight, bias, scale, W)

    # Chip-aware grid: per-image parallel grid on 2-TC chips (v7x); otherwise
    # fold the batch into one MXU matmul (v5e/v6e and conservative fallback).
    rows_per_step = H if _use_per_image_grid(N) else N * H

    out = upscale_ps_forward(x, T, b_tiled, scale=scale,
                             rows_per_step=rows_per_step)
    out = jax.block_until_ready(out)

    ref = _reference_forward(x, weight, bias, scale)
    assert out.shape == (N, output_ch, H * scale, W * scale), out.shape
    assert jnp.allclose(out, ref, atol=1e-4, rtol=1e-4), \
        float(jnp.max(jnp.abs(out - ref)))

    print("KERNEL_OK")
</pallas_src>

<mosaic_0001>
module attributes {stable_mosaic.version = 11 : i64} {
  func.func @_conv3x3_bias_tanh_kernel(%arg0: i32, %arg1: memref<32x256xf32, #tpu.memory_space<vmem>>, %arg2: memref<256x256xf32, #tpu.memory_space<vmem>>, %arg3: memref<1x256xf32, #tpu.memory_space<vmem>>, %arg4: memref<32x256xf32, #tpu.memory_space<vmem>>) attributes {dimension_semantics = [#tpu.dimension_semantics<parallel>], iteration_bounds = array<i64: 1>, scalar_prefetch = 0 : i64, scratch_operands = 0 : i64, tpu.core_type = #tpu.core_type<tc>, window_params = [{transform_indices = @transform_0, window_bounds = array<i64: 32, 256>}, {pipeline_mode = #tpu.pipeline_mode<synchronous>, transform_indices = @transform_1, window_bounds = array<i64: 256, 256>}, {pipeline_mode = #tpu.pipeline_mode<synchronous>, transform_indices = @transform_2, window_bounds = array<i64: 1, 256>}, {transform_indices = @transform_3, window_bounds = array<i64: 32, 256>}]} {
    %c0 = arith.constant 0 : index
    %c0_0 = arith.constant 0 : index
    %0 = vector.load %arg1[%c0, %c0_0] : memref<32x256xf32, #tpu.memory_space<vmem>>, vector<32x256xf32>
    %c0_1 = arith.constant 0 : index
    %c0_2 = arith.constant 0 : index
    %1 = vector.load %arg2[%c0_1, %c0_2] : memref<256x256xf32, #tpu.memory_space<vmem>>, vector<256x256xf32>
    %cst = arith.constant dense<0.000000e+00> : vector<32x256xf32>
    %2 = tpu.matmul %0, %1, %cst {dimension_numbers = #tpu.dot_dimension_numbers<[1], [0], [0], [1], [0, 0, 1, 1], [], []>} : vector<32x256xf32>, vector<256x256xf32>, vector<32x256xf32> -> vector<32x256xf32>
    %c0_3 = arith.constant 0 : index
    %c0_4 = arith.constant 0 : index
    %3 = vector.load %arg3[%c0_3, %c0_4] : memref<1x256xf32, #tpu.memory_space<vmem>>, vector<1x256xf32>
    %4 = vector.broadcast %3 : vector<1x256xf32> to vector<32x256xf32>
    %5 = arith.addf %2, %4 : vector<32x256xf32>
    %6 = math.tanh %5 : vector<32x256xf32>
    %c0_5 = arith.constant 0 : index
    %c0_6 = arith.constant 0 : index
    %7 = vector.load %arg4[%c0_5, %c0_6] : memref<32x256xf32, #tpu.memory_space<vmem>>, vector<32x256xf32>
    tpu.vector_store %arg4[%c0_5, %c0_6], %6 {strides = array<i32>} : memref<32x256xf32, #tpu.memory_space<vmem>>, vector<32x256xf32>,
    return
  }
  func.func @transform_0(%arg0: i32) -> (i32, i32) {
    %c0_i32 = arith.constant 0 : i32
    %c0_i32_0 = arith.constant 0 : i32
    return %arg0, %c0_i32 : i32, i32
  }
  func.func @transform_1(%arg0: i32) -> (i32, i32) {
    %c0_i32 = arith.constant 0 : i32
    %c0_i32_0 = arith.constant 0 : i32
    %c0_i32_1 = arith.constant 0 : i32
    return %c0_i32, %c0_i32_0 : i32, i32
  }
  func.func @transform_2(%arg0: i32) -> (i32, i32) {
    %c0_i32 = arith.constant 0 : i32
    %c0_i32_0 = arith.constant 0 : i32
    %c0_i32_1 = arith.constant 0 : i32
    return %c0_i32, %c0_i32_0 : i32, i32
  }
  func.func @transform_3(%arg0: i32) -> (i32, i32) {
    %c0_i32 = arith.constant 0 : i32
    %c0_i32_0 = arith.constant 0 : i32
    return %arg0, %c0_i32 : i32, i32
  }
}

</mosaic_0001>

<bundles_post_ra>
// kernel: upscale_ps_forward.1
= control target key start
LH: loop header
LB: loop body
LE: loop exit
PB: predicated region body
PF: predicated region fallthrough
CT: control target
= control target key end

     0   :  { %s582_s1 = inlined_call_operand.vmem [shape: f32[256,256], index: 1, kind: input, shape index: {}]   ;;  %s583_s0 = inlined_call_operand.vmem [shape: f32[32,256], index: 0, kind: input, shape index: {}]   ;;  %s584_s2 = inlined_call_operand.vmem [shape: f32[1,256], index: 2, kind: input, shape index: {}]   ;;  %s585_s3 = inlined_call_operand.vmem [shape: f32[32,256], index: 3, kind: output, shape index: {}]  }
   0x1   :  { %v23_v0 = vld [vmem:[%s582_s1 + $0x8] sm:$0xff]  ;;  %v25_v1 = vld [vmem:[%s582_s1 + $0x18] sm:$0xff]  ;;  %v22_v2 = vld [vmem:[%s582_s1] sm:$0xff] }
   0x2   :  { %v207_v3 = vpack.c.bf16 %v25_v1, %v23_v0  ;;  %v24_v4 = vld [vmem:[%s582_s1 + $0x10] sm:$0xff]  ;;  %v27_v5 = vld [vmem:[%s582_s1 + $0x28] sm:$0xff]  ;;  %v29_v6 = vld [vmem:[%s582_s1 + $0x38] sm:$0xff] }
   0x3   :  { %v209_v7 = vpack.c.bf16 %v24_v4, %v22_v2  ;;  %v211_v8 = vpack.c.bf16 %v29_v6, %v27_v5  ;;  %v26_v9 = vld [vmem:[%s582_s1 + $0x20] sm:$0xff]  ;;  %v28_v10 = vld [vmem:[%s582_s1 + $0x30] sm:$0xff]  ;;  %v31_v11 = vld [vmem:[%s582_s1 + $0x48] sm:$0xff] }
   0x4   :  { %208 = vmatprep.subr.bf16.mxu0 %v207_v3  ;;  %271 = vmatprep.subr.bf16.mxu1 %v207_v3  ;;  %v33_v12 = vld [vmem:[%s582_s1 + $0x58] sm:$0xff]  ;;  %v213_v13 = vpack.c.bf16 %v28_v10, %v26_v9  ;;  %v30_v15 = vld [vmem:[%s582_s1 + $0x40] sm:$0xff]  ;;  %v32_v16 = vld [vmem:[%s582_s1 + $0x50] sm:$0xff] }
   0x5   :  { %210 = vmatpush1.bf16.msra.mxu0 %v209_v7  ;;  %287 = vmatpush1.bf16.msra.mxu1 %v209_v7  ;;  %v215_v14 = vpack.c.bf16 %v33_v12, %v31_v11  ;;  %v35_v17 = vld [vmem:[%s582_s1 + $0x68] sm:$0xff]  ;;  %v37_v18 = vld [vmem:[%s582_s1 + $0x78] sm:$0xff]  ;;  %v217_v19 = vpack.c.bf16 %v32_v16, %v30_v15  ;;  %v34_v21 = vld [vmem:[%s582_s1 + $0x60] sm:$0xff] }
   0x6   :  { %212 = vmatprep.subr.bf16.mxu0 %v211_v8  ;;  %272 = vmatprep.subr.bf16.mxu1 %v211_v8  ;;  %v219_v20 = vpack.c.bf16 %v37_v18, %v35_v17  ;;  %v36_v22 = vld [vmem:[%s582_s1 + $0x70] sm:$0xff]  ;;  %v39_v23 = vld [vmem:[%s582_s1 + $0x88] sm:$0xff]  ;;  %v41_v24 = vld [vmem:[%s582_s1 + $0x98] sm:$0xff] }
   0x7   :  { %v221_v25 = vpack.c.bf16 %v36_v22, %v34_v21  ;;  %v223_v26 = vpack.c.bf16 %v41_v24, %v39_v23  ;;  %v38_v27 = vld [vmem:[%s582_s1 + $0x80] sm:$0xff]  ;;  %v40_v28 = vld [vmem:[%s582_s1 + $0x90] sm:$0xff]  ;;  %v43_v29 = vld [vmem:[%s582_s1 + $0xa8] sm:$0xff] }
   0x8   :  { %v45_v30 = vld [vmem:[%s582_s1 + $0xb8] sm:$0xff]  ;;  %v225_v31 = vpack.c.bf16 %v40_v28, %v38_v27  ;;  %v42_v33 = vld [vmem:[%s582_s1 + $0xa0] sm:$0xff]  ;;  %v44_v34 = vld [vmem:[%s582_s1 + $0xb0] sm:$0xff] }
   0x9   :  { %214 = vmatpush1.bf16.msra.mxu0 %v213_v13  ;;  %288 = vmatpush1.bf16.msra.mxu1 %v213_v13  ;;  %v227_v32 = vpack.c.bf16 %v45_v30, %v43_v29  ;;  %v47_v35 = vld [vmem:[%s582_s1 + $0xc8] sm:$0xff]  ;;  %v49_v36 = vld [vmem:[%s582_s1 + $0xd8] sm:$0xff]  ;;  %v229_v37 = vpack.c.bf16 %v44_v34, %v42_v33  ;;  %v46_v38 = vld [vmem:[%s582_s1 + $0xc0] sm:$0xff] }
   0xa   :  { %216 = vmatprep.subr.bf16.mxu0 %v215_v14  ;;  %273 = vmatprep.subr.bf16.mxu1 %v215_v14  ;;  %v231_v39 = vpack.c.bf16 %v49_v36, %v47_v35  ;;  %v48_v40 = vld [vmem:[%s582_s1 + $0xd0] sm:$0xff]  ;;  %v15_v41 = vld [vmem:[%s583_s0 + $0x8] sm:$0xff]  ;;  %v53_v44 = vld [vmem:[%s582_s1 + $0xf8] sm:$0xff] }
   0xb   :  { %v19_v42 = vld [vmem:[%s583_s0 + $0x28] sm:$0xff]  ;;  %162 = vmatprep.mubr.f32.mxu0 %v15_v41  ;;  %v233_v45 = vpack.c.bf16 %v48_v40, %v46_v38  ;;  %v50_v47 = vld [vmem:[%s582_s1 + $0xe0] sm:$0xff]  ;;  %v52_v48 = vld [vmem:[%s582_s1 + $0xf0] sm:$0xff]  ;;  %v88_v40 = vlaneseq }
   0xc   :  { %v51_v43 = vld [vmem:[%s582_s1 + $0xe8] sm:$0xff]  ;;  %174 = vmatprep.mubr.f32.mxu1 %v19_v42  ;;  %v57_v50 = vld [vmem:[%s582_s1 + $0x118] sm:$0xff]  ;;  %v237_v51 = vpack.c.bf16 %v52_v48, %v50_v47  ;;  %v54_v53 = vld [vmem:[%s582_s1 + $0x100] sm:$0xff] }
   0xd   :  { %218 = vmatpush1.bf16.msra.mxu0 %v217_v19  ;;  %289 = vmatpush1.bf16.msra.mxu1 %v217_v19  ;;  %v235_v46 = vpack.c.bf16 %v53_v44, %v51_v43  ;;  %v55_v49 = vld [vmem:[%s582_s1 + $0x108] sm:$0xff]  ;;  %v56_v54 = vld [vmem:[%s582_s1 + $0x110] sm:$0xff]  ;;  %v61_v56 = vld [vmem:[%s582_s1 + $0x138] sm:$0xff]  ;;  %v89_v41 = vshrl.u32 %v88_v40, 7 }
   0xe   :  { %220 = vmatprep.subr.bf16.mxu0 %v219_v20  ;;  %274 = vmatprep.subr.bf16.mxu1 %v219_v20  ;;  %v239_v52 = vpack.c.bf16 %v57_v50, %v55_v49  ;;  %v59_v55 = vld [vmem:[%s582_s1 + $0x128] sm:$0xff]  ;;  %v241_v57 = vpack.c.bf16 %v56_v54, %v54_v53  ;;  %v58_v59 = vld [vmem:[%s582_s1 + $0x120] sm:$0xff]  ;;  %v60_v60 = vld [vmem:[%s582_s1 + $0x130] sm:$0xff] }
   0xf   :  { %v243_v58 = vpack.c.bf16 %v61_v56, %v59_v55  ;;  %v63_v61 = vld [vmem:[%s582_s1 + $0x148] sm:$0xff]  ;;  %v65_v62 = vld [vmem:[%s582_s1 + $0x158] sm:$0xff]  ;;  %v245_v63 = vpack.c.bf16 %v60_v60, %v58_v59  ;;  %v62_v1 = vld [vmem:[%s582_s1 + $0x140] sm:$0xff]  ;;  %v90_v42 = vsub.s32 0, %v89_v41  ;;  %v94_v44 = vsub.s32 1, %v89_v41 }
  0x10   :  { %v247_v0 = vpack.c.bf16 %v65_v62, %v63_v61  ;;  %v64_v2 = vld [vmem:[%s582_s1 + $0x150] sm:$0xff]  ;;  %v67_v3 = vld [vmem:[%s582_s1 + $0x168] sm:$0xff]  ;;  %v69_v4 = vld [vmem:[%s582_s1 + $0x178] sm:$0xff] }
  0x11   :  { %222 = vmatpush1.bf16.msra.mxu0 %v221_v25  ;;  %290 = vmatpush1.bf16.msra.mxu1 %v221_v25  ;;  %v249_v5 = vpack.c.bf16 %v64_v2, %v62_v1  ;;  %v251_v6 = vpack.c.bf16 %v69_v4, %v67_v3  ;;  %v66_v7 = vld [vmem:[%s582_s1 + $0x160] sm:$0xff]  ;;  %v68_v8 = vld [vmem:[%s582_s1 + $0x170] sm:$0xff]  ;;  %v71_v9 = vld [vmem:[%s582_s1 + $0x188] sm:$0xff] }
  0x12   :  { %224 = vmatprep.subr.bf16.mxu0 %v223_v26  ;;  %275 = vmatprep.subr.bf16.mxu1 %v223_v26  ;;  %v73_v10 = vld [vmem:[%s582_s1 + $0x198] sm:$0xff]  ;;  %v253_v11 = vpack.c.bf16 %v68_v8, %v66_v7  ;;  %v70_v13 = vld [vmem:[%s582_s1 + $0x180] sm:$0xff]  ;;  %v72_v14 = vld [vmem:[%s582_s1 + $0x190] sm:$0xff] }
  0x13   :  { %v255_v12 = vpack.c.bf16 %v73_v10, %v71_v9  ;;  %v75_v15 = vld [vmem:[%s582_s1 + $0x1a8] sm:$0xff]  ;;  %v77_v16 = vld [vmem:[%s582_s1 + $0x1b8] sm:$0xff]  ;;  %v257_v17 = vpack.c.bf16 %v72_v14, %v70_v13  ;;  %v74_v19 = vld [vmem:[%s582_s1 + $0x1a0] sm:$0xff] }
  0x14   :  { %v259_v18 = vpack.c.bf16 %v77_v16, %v75_v15  ;;  %v76_v20 = vld [vmem:[%s582_s1 + $0x1b0] sm:$0xff]  ;;  %v79_v21 = vld [vmem:[%s582_s1 + $0x1c8] sm:$0xff]  ;;  %v81_v22 = vld [vmem:[%s582_s1 + $0x1d8] sm:$0xff] }
  0x15   :  { %226 = vmatpush1.bf16.msra.mxu0 %v225_v31  ;;  %291 = vmatpush1.bf16.msra.mxu1 %v225_v31  ;;  %v261_v23 = vpack.c.bf16 %v76_v20, %v74_v19  ;;  %v263_v24 = vpack.c.bf16 %v81_v22, %v79_v21  ;;  %v78_v25 = vld [vmem:[%s582_s1 + $0x1c0] sm:$0xff]  ;;  %v80_v26 = vld [vmem:[%s582_s1 + $0x1d0] sm:$0xff]  ;;  %v83_v27 = vld [vmem:[%s582_s1 + $0x1e8] sm:$0xff] }
  0x16   :  { %228 = vmatprep.subr.bf16.mxu0 %v227_v32  ;;  %276 = vmatprep.subr.bf16.mxu1 %v227_v32  ;;  %v85_v28 = vld [vmem:[%s582_s1 + $0x1f8] sm:$0xff]  ;;  %v265_v29 = vpack.c.bf16 %v80_v26, %v78_v25  ;;  %v82_v31 = vld [vmem:[%s582_s1 + $0x1e0] sm:$0xff]  ;;  %v84_v32 = vld [vmem:[%s582_s1 + $0x1f0] sm:$0xff] }
  0x17   :  { %v267_v30 = vpack.c.bf16 %v85_v28, %v83_v27  ;;  %v269_v33 = vpack.c.bf16 %v84_v32, %v82_v31  ;;  %v14_v34 = vld [vmem:[%s583_s0] sm:$0xff]  ;;  %v17_v36 = vld [vmem:[%s583_s0 + $0x18] sm:$0xff]  ;;  %v16_v38 = vld [vmem:[%s583_s0 + $0x10] sm:$0xff] }
  0x18   :  { %v18_v35 = vld [vmem:[%s583_s0 + $0x20] sm:$0xff] }
  0x19   :  { %230 = vmatpush1.bf16.msra.mxu0 %v229_v37  ;;  %292 = vmatpush1.bf16.msra.mxu1 %v229_v37  ;;  %v21_v37 = vld [vmem:[%s583_s0 + $0x38] sm:$0xff]  ;;  %v86_v43 = vld [vmem:[%s584_s2] sm:$0x3] }
  0x1a   :  { %232 = vmatprep.subr.bf16.mxu0 %v231_v39  ;;  %277 = vmatprep.subr.bf16.mxu1 %v231_v39  ;;  %v20_v39 = vld [vmem:[%s583_s0 + $0x30] sm:$0xff] }
  0x1d   :  { %234 = vmatpush1.bf16.msra.mxu0 %v233_v45  ;;  %293 = vmatpush1.bf16.msra.mxu1 %v233_v45  ;;  %v91_v45 = vrot.slane %v86_v43, %v90_v42 }
  0x1e   :  { %236 = vmatprep.subr.bf16.mxu0 %v235_v46  ;;  %278 = vmatprep.subr.bf16.mxu1 %v235_v46  ;;  %v95_v46 = vrot.slane %v86_v43, %v94_v44 }
  0x21   :  { %238 = vmatpush1.bf16.msra.mxu0 %v237_v51  ;;  %294 = vmatpush1.bf16.msra.mxu1 %v237_v51 }
  0x22   :  { %240 = vmatprep.subr.bf16.mxu0 %v239_v52  ;;  %279 = vmatprep.subr.bf16.mxu1 %v239_v52 }
  0x25   :  { %242 = vmatpush1.bf16.msra.mxu0 %v241_v57  ;;  %295 = vmatpush1.bf16.msra.mxu1 %v241_v57 }
  0x26   :  { %244 = vmatprep.subr.bf16.mxu0 %v243_v58  ;;  %280 = vmatprep.subr.bf16.mxu1 %v243_v58 }
  0x29   :  { %246 = vmatpush1.bf16.msra.mxu0 %v245_v63  ;;  %296 = vmatpush1.bf16.msra.mxu1 %v245_v63 }
  0x2a   :  { %248 = vmatprep.subr.bf16.mxu0 %v247_v0  ;;  %281 = vmatprep.subr.bf16.mxu1 %v247_v0 }
  0x2d   :  { %250 = vmatpush1.bf16.msra.mxu0 %v249_v5  ;;  %297 = vmatpush1.bf16.msra.mxu1 %v249_v5 }
  0x2e   :  { %252 = vmatprep.subr.bf16.mxu0 %v251_v6  ;;  %282 = vmatprep.subr.bf16.mxu1 %v251_v6 }
  0x31   :  { %254 = vmatpush1.bf16.msra.mxu0 %v253_v11  ;;  %298 = vmatpush1.bf16.msra.mxu1 %v253_v11 }
  0x32   :  { %256 = vmatprep.subr.bf16.mxu0 %v255_v12  ;;  %283 = vmatprep.subr.bf16.mxu1 %v255_v12 }
  0x35   :  { %258 = vmatpush1.bf16.msra.mxu0 %v257_v17  ;;  %299 = vmatpush1.bf16.msra.mxu1 %v257_v17 }
  0x36   :  { %260 = vmatprep.subr.bf16.mxu0 %v259_v18  ;;  %284 = vmatprep.subr.bf16.mxu1 %v259_v18 }
  0x39   :  { %262 = vmatpush1.bf16.msra.mxu0 %v261_v23  ;;  %300 = vmatpush1.bf16.msra.mxu1 %v261_v23 }
  0x3a   :  { %264 = vmatprep.subr.bf16.mxu0 %v263_v24  ;;  %285 = vmatprep.subr.bf16.mxu1 %v263_v24 }
  0x3d   :  { %266 = vmatpush1.bf16.msra.mxu0 %v265_v29  ;;  %301 = vmatpush1.bf16.msra.mxu1 %v265_v29 }
  0x3e   :  { %268 = vmatprep.subr.bf16.mxu0 %v267_v30  ;;  %286 = vmatprep.subr.bf16.mxu1 %v267_v30 }
  0x41   :  { %270 = vmatpush1.bf16.msra.mxu0 %v269_v33  ;;  %302 = vmatpush1.bf16.msra.mxu1 %v269_v33 }
  0x44   :  { %163 = vmatmul.mubr.f32.vlgmr.msra.gmra.mrb[0].mxu0 %v14_v34  ;;  %175 = vmatmul.mubr.f32.vlgmr.msra.gmra.mrb[0].mxu1 %v18_v35 }
  0x45   :  { %168 = vmatprep.mubr.f32.mxu0 %v17_v36  ;;  %180 = vmatprep.mubr.f32.mxu1 %v21_v37 }
  0x48   :  { %169 = vmatmul.mubr.f32.gmra.mrb[2].mxu0 %v16_v38  ;;  %181 = vmatmul.mubr.f32.gmra.mrb[2].mxu1 %v20_v39 }
 0x117   :  { %v164_v47 = vpop.f32.mrb[0].mxu0  ;;  %v176_v48 = vpop.f32.mrb[0].mxu1 }
 0x118   :  { %v165_v49 = vadd.f32 %v164_v47, %v91_v45  ;;  %v177_v50 = vadd.f32 %v176_v48, %v91_v45  ;;  %v166_v51 = vpop.f32.mrb[1].mxu0  ;;  %v178_v52 = vpop.f32.mrb[1].mxu1 }
 0x119   :  { %v167_v53 = vadd.f32 %v166_v51, %v95_v46  ;;  %v179_v54 = vadd.f32 %v178_v52, %v95_v46 }
 0x11a   :  { %303 = vtanh.f32 %v165_v49 }
 0x11b   :  { %305 = vtanh.f32 %v177_v50  ;;  %v170_v55 = vpop.f32.mrb[2].mxu0  ;;  %v182_v56 = vpop.f32.mrb[2].mxu1 }
 0x11c   :  { %307 = vtanh.f32 %v167_v53  ;;  %v171_v57 = vadd.f32 %v170_v55, %v91_v45  ;;  %v183_v58 = vadd.f32 %v182_v56, %v91_v45  ;;  %v172_v59 = vpop.f32.mrb[3].mxu0  ;;  %v184_v60 = vpop.f32.mrb[3].mxu1 }
 0x11d   :  { %309 = vtanh.f32 %v179_v54  ;;  %v173_v61 = vadd.f32 %v172_v59, %v95_v46  ;;  %v185_v62 = vadd.f32 %v184_v60, %v95_v46 }
 0x11e   :  { %311 = vtanh.f32 %v171_v57 }
 0x11f   :  { %313 = vtanh.f32 %v183_v58 }
 0x120   :  { %315 = vtanh.f32 %v173_v61 }
 0x121   :  { %317 = vtanh.f32 %v185_v62 }
 0x124   :  { %v304_v63 = vpop.eup %303 }
 0x125   :  { %v306_v0 = vpop.eup %305  ;;  %195 = vst [vmem:[%s585_s3] sm:$0xff] %v304_v63 }
 0x126   :  { %v308_v1 = vpop.eup %307  ;;  %199 = vst [vmem:[%s585_s3 + $0x20] sm:$0xff] %v306_v0 }
 0x127   :  { %v310_v2 = vpop.eup %309  ;;  %196 = vst [vmem:[%s585_s3 + $0x8] sm:$0xff] %v308_v1 }
 0x128   :  { %v312_v3 = vpop.eup %311  ;;  %200 = vst [vmem:[%s585_s3 + $0x28] sm:$0xff] %v310_v2 }
 0x129   :  { %v314_v4 = vpop.eup %313  ;;  %197 = vst [vmem:[%s585_s3 + $0x10] sm:$0xff] %v312_v3 }
 0x12a   :  { %v316_v5 = vpop.eup %315  ;;  %201 = vst [vmem:[%s585_s3 + $0x30] sm:$0xff] %v314_v4 }
 0x12b   :  { %v318_v6 = vpop.eup %317  ;;  %198 = vst [vmem:[%s585_s3 + $0x18] sm:$0xff] %v316_v5 }
 0x12c   :  { %202 = vst [vmem:[%s585_s3 + $0x38] sm:$0xff] %v318_v6 }

</bundles_post_ra>
